<compile_context>
chip_gen: v7x
topology: tpu7x:2x2x1
jax: 0.10.0
libtpu: 0.0.40
codegen_flags: <defaults>
</compile_context>

<pallas_src>
import functools

import jax
import jax.numpy as jnp
from jax.experimental import pallas as pl
from jax.experimental.pallas import tpu as pltpu


def _round_up(x, m):
    return ((x + m - 1) // m) * m


@functools.lru_cache(maxsize=1)
def _vmem_limit_bytes():
    """Per-generation VMEM budget: ~3/4 of physical VMEM, capped at 100 MiB.

    v5e/v6e have 128 MiB of VMEM -> 100 MiB; v7x has 64 MiB -> ~48 MiB.
    Falls back to a conservative 48 MiB if the query is unavailable."""
    try:
        cap = int(pltpu.get_tpu_info().vmem_capacity_bytes)
    except Exception:
        cap = 64 * 1024 * 1024
    return min((cap * 3) // 4, 100 * 1024 * 1024)


# ----------------------------------------------------------------------------
# Pallas kernel: fused 3x3 / stride-2 / pad-1 conv (+ fused BN bias) + SiLU for
# one image.  The stride-2 patch extraction is folded into 9 shifted dots over
# the phase-split input; accumulation is f32, stores are lane-dense over the
# flattened pixel axis.
# ----------------------------------------------------------------------------
def _conv3x3s2_silu_kernel(w_ref, b_ref, f_ref, o_ref, *, wph, m_valid):
    """
    w_ref: (9, Cout, Cin_pad) bf16   one (Cout, Cin) weight slice per 3x3 tap
    b_ref: (Cout, 1) f32             fused Conv+BN bias
    f_ref: (1, 4, Cin_pad, Mflat) bf16   stride-2 phase-split input, flattened
                                         over the (Hout+2, Wout+1) phase grid
    o_ref: (1, Cout, Mv)             conv output on the (Hout, Wout+1) grid
    """
    acc = None
    for i in range(3):
        for j in range(3):
            p = 2 * (i % 2) + (j % 2)          # phase = (row parity, col parity)
            off = (i // 2) * wph + (j // 2)    # static shift inside the phase grid
            x_tap = f_ref[0, p, :, off:off + m_valid]          # (Cin_pad, Mv) bf16
            d = jnp.dot(w_ref[3 * i + j], x_tap,
                        preferred_element_type=jnp.float32)    # (Cout, Mv) f32
            acc = d if acc is None else acc + d
    acc = acc + b_ref[...]                     # (Cout, 1) broadcasts over lanes
    # SiLU = x * sigmoid(x); keep the divide on the EUP via approx reciprocal.
    sig = pl.reciprocal(1.0 + jnp.exp(-acc), approx=True)
    o_ref[0] = (acc * sig).astype(o_ref.dtype)


def _conv3x3s2_silu(x_nchw, w_taps, b_col, out_dtype):
    """3x3 / stride-2 / pad-1 Conv2d (+fused BN bias) + SiLU.  NCHW in/out."""
    N, Cin, H, W = x_nchw.shape
    _, Cout, Cin_pad = w_taps.shape
    assert H % 2 == 0 and W % 2 == 0, "stride-2 stem expects even H, W"
    Hout, Wout = H // 2, W // 2
    Hph, Wph = Hout + 2, Wout + 1       # phase grid: +1 halo row/col, +1 slack row
    Mflat = Hph * Wph                    # flattened phase-grid length (per phase)
    Mv = Hout * Wph                      # positions computed per image (rows fully)

    # Single layout pass: bf16 cast + zero pad (conv halo, slack row, channel pad)
    # + stride-2 phase split + flatten.  Total bytes written == 1x the input.
    xp = jnp.pad(x_nchw.astype(jnp.bfloat16),
                 ((0, 0), (0, Cin_pad - Cin), (1, 3), (1, 1)))
    fph = (xp.reshape(N, Cin_pad, Hph, 2, Wph, 2)
             .transpose(0, 3, 5, 1, 2, 4)          # (N, rp, cp, Cin_pad, Hph, Wph)
             .reshape(N, 4, Cin_pad, Mflat))

    kernel = functools.partial(_conv3x3s2_silu_kernel, wph=Wph, m_valid=Mv)
    out = pl.pallas_call(
        kernel,
        out_shape=jax.ShapeDtypeStruct((N, Cout, Mv), out_dtype),
        grid_spec=pltpu.PrefetchScalarGridSpec(
            num_scalar_prefetch=0,
            grid=(N,),
            in_specs=[
                pl.BlockSpec((9, Cout, Cin_pad), lambda n: (0, 0, 0, 0)[:3]),
                pl.BlockSpec((Cout, 1), lambda n: (0, 0)),
                pl.BlockSpec((1, 4, Cin_pad, Mflat), lambda n: (n, 0, 0, 0)),
            ],
            out_specs=pl.BlockSpec((1, Cout, Mv), lambda n: (n, 0, 0)),
        ),
        compiler_params=pltpu.CompilerParams(
            dimension_semantics=("parallel",),
            vmem_limit_bytes=_vmem_limit_bytes()),
    )(w_taps, b_col, fph)

    # Drop the per-row halo column.  Under jit this slice fuses into the next
    # layer's pad/phase pass (or the final output cast).
    return out.reshape(N, Cout, Hout, Wph)[:, :, :, :Wout]


# ----------------------------------------------------------------------------
# AutoBackend equivalent (PyTorch "pt" branch)
# ----------------------------------------------------------------------------
class AutoBackendPallas:
    """Mirrors AutoBackend.__init__ flags and forward() dispatch semantics for
    the PyTorch ("pt") branch, with a deterministic synthetic fused model."""

    def __init__(self, key, fp16=False):
        # Flags as in AutoBackend.__init__ when given a *.pt weight path.
        self.pt = True
        self.nn_module = False
        self.onnx = False
        self.engine = False
        self.fp16 = fp16            # fp16 &= pt  (pt=True, so honored)
        self.stride = 32
        self.names = {i: f"class{i}" for i in range(80)}

        # Deterministic synthetic weights (fused Conv+BN, so bias only).
        k1, k2, k3, k4 = jax.random.split(key, 4)
        self.w1 = jax.random.normal(k1, (16, 3, 3, 3), jnp.float32) * 0.1
        self.b1 = jax.random.normal(k2, (16,), jnp.float32) * 0.1
        self.w2 = jax.random.normal(k3, (32, 16, 3, 3), jnp.float32) * 0.05
        self.b2 = jax.random.normal(k4, (32,), jnp.float32) * 0.1

        # Pre-cast ONCE: per-tap (Cout, Cin_pad) bf16 weights + (Cout, 1) f32
        # bias, so no per-forward XLA cast ops and the weights stay
        # VMEM-resident (constant index maps).
        self.w1_taps = self._to_taps(self.w1)
        self.w2_taps = self._to_taps(self.w2)
        self.b1_col = self.b1.reshape(-1, 1).astype(jnp.float32)
        self.b2_col = self.b2.reshape(-1, 1).astype(jnp.float32)

        self._jit_model = jax.jit(self._model)

    @staticmethod
    def _to_taps(w_oihw):
        cout, cin, kh, kw = w_oihw.shape
        cin_pad = _round_up(cin, 8)                     # sublane-friendly K
        w = jnp.pad(w_oihw, ((0, 0), (0, cin_pad - cin), (0, 0), (0, 0)))
        return (jnp.transpose(w, (2, 3, 0, 1))
                  .reshape(kh * kw, cout, cin_pad)
                  .astype(jnp.bfloat16))

    def _model(self, im_nchw):
        out_dtype = im_nchw.dtype
        # Inter-layer activation stays bf16 (it is re-quantized for the layer-2
        # MXU feed anyway); only the final output returns the input dtype.
        x = _conv3x3s2_silu(im_nchw, self.w1_taps, self.b1_col, jnp.bfloat16)
        x = _conv3x3s2_silu(x, self.w2_taps, self.b2_col, out_dtype)
        return x

    def forward(self, im, augment=False, visualize=False):
        # TODO(synk): augment/visualize branches depend on the wrapped YOLO
        # model's extra return values; plain inference path implemented.
        if self.fp16 and im.dtype != jnp.bfloat16:
            # bfloat16 is the TPU-native reduced-precision dtype (fp16 is not
            # an MXU input type); semantics of the "half" flag are preserved.
            im = im.astype(jnp.bfloat16)
        if self.pt or self.nn_module:
            y = self._jit_model(im)
        else:
            # TODO(synk): onnx / tensorrt backends have no Pallas equivalent.
            raise NotImplementedError("only the PyTorch ('pt') branch is implemented")
        # from_numpy / list unwrapping semantics of AutoBackend.forward:
        if isinstance(y, (list, tuple)):
            return y[0] if len(y) == 1 else list(y)
        return y

    def __call__(self, im):
        return self.forward(im)


# ----------------------------------------------------------------------------
# Reference check (pure JAX conv, no Pallas), same bf16-in / f32-acc recipe.
# ----------------------------------------------------------------------------
def _reference_forward(backend, im):
    def conv_ref(x, w, b, stride, pad):
        y = jax.lax.conv_general_dilated(
            x.astype(jnp.bfloat16), w.astype(jnp.bfloat16),
            window_strides=(stride, stride),
            padding=((pad, pad), (pad, pad)),
            dimension_numbers=("NCHW", "OIHW", "NCHW"),
            preferred_element_type=jnp.float32)
        y = y + b.reshape(1, -1, 1, 1)
        return y * jax.nn.sigmoid(y)

    x = conv_ref(im, backend.w1, backend.b1, 2, 1)
    x = conv_ref(x, backend.w2, backend.b2, 2, 1)
    return x


if __name__ == "__main__":
    key = jax.random.PRNGKey(0)
    k_in, k_params = jax.random.split(key)

    # Small NCHW image, consistent with the module's (batch, 3, H, W) inputs.
    im = jax.random.normal(k_in, (2, 3, 32, 32), jnp.float32)

    # Default (f32 output) path.
    backend = AutoBackendPallas(k_params, fp16=False)
    out = jax.block_until_ready(backend(im))
    ref = jax.block_until_ready(_reference_forward(backend, im))
    assert out.shape == (2, 32, 8, 8), out.shape
    assert out.dtype == jnp.float32, out.dtype
    max_err = float(jnp.max(jnp.abs(out - ref)))
    assert jnp.allclose(out, ref, atol=2e-2, rtol=2e-2), (
        f"mismatch vs reference, max err {max_err}")

    # fp16 flag path (lowered to bfloat16 on TPU).
    backend_h = AutoBackendPallas(k_params, fp16=True)
    out_h = jax.block_until_ready(backend_h(im))
    assert out_h.shape == (2, 32, 8, 8), out_h.shape
    assert out_h.dtype == jnp.bfloat16, out_h.dtype
    assert bool(jnp.all(jnp.isfinite(out_h.astype(jnp.float32))))
    assert jnp.allclose(out_h.astype(jnp.float32), ref, atol=1e-1, rtol=1e-1), (
        "bf16 path mismatch vs reference")

    print("KERNEL_OK")
</pallas_src>

<mosaic_0001>
module attributes {stable_mosaic.version = 11 : i64} {
  func.func @_conv3x3s2_silu_kernel(%arg0: i32, %arg1: memref<9x16x8xbf16, #tpu.memory_space<vmem>>, %arg2: memref<16x1xf32, #tpu.memory_space<vmem>>, %arg3: memref<1x4x8x306xbf16, #tpu.memory_space<vmem>>, %arg4: memref<1x16x272xbf16, #tpu.memory_space<vmem>>) attributes {dimension_semantics = [#tpu.dimension_semantics<parallel>], iteration_bounds = array<i64: 2>, scalar_prefetch = 0 : i64, scratch_operands = 0 : i64, tpu.core_type = #tpu.core_type<tc>, window_params = [{pipeline_mode = #tpu.pipeline_mode<synchronous>, transform_indices = @transform_0, window_bounds = array<i64: 9, 16, 8>}, {pipeline_mode = #tpu.pipeline_mode<synchronous>, transform_indices = @transform_1, window_bounds = array<i64: 16, 1>}, {transform_indices = @transform_2, window_bounds = array<i64: 1, 4, 8, 306>}, {transform_indices = @transform_3, window_bounds = array<i64: 1, 16, 272>}]} {
    %c0 = arith.constant 0 : index
    %c0_0 = arith.constant 0 : index
    %c0_1 = arith.constant 0 : index
    %c0_2 = arith.constant 0 : index
    %0 = vector.load %arg3[%c0, %c0_0, %c0_1, %c0_2] : memref<1x4x8x306xbf16, #tpu.memory_space<vmem>>, vector<1x1x8x272xbf16>
    %1 = vector.shape_cast %0 : vector<1x1x8x272xbf16> to vector<8x272xbf16>
    %c0_3 = arith.constant 0 : index
    %c0_4 = arith.constant 0 : index
    %c0_5 = arith.constant 0 : index
    %2 = vector.load %arg1[%c0_3, %c0_4, %c0_5] : memref<9x16x8xbf16, #tpu.memory_space<vmem>>, vector<1x16x8xbf16>
    %3 = vector.shape_cast %2 : vector<1x16x8xbf16> to vector<16x8xbf16>
    %cst = arith.constant dense<0.000000e+00> : vector<16x272xf32>
    %4 = tpu.matmul %3, %1, %cst {dimension_numbers = #tpu.dot_dimension_numbers<[1], [0], [0], [1], [0, 0, 1, 1], [], []>} : vector<16x8xbf16>, vector<8x272xbf16>, vector<16x272xf32> -> vector<16x272xf32>
    %c0_6 = arith.constant 0 : index
    %c1 = arith.constant 1 : index
    %c0_7 = arith.constant 0 : index
    %c0_8 = arith.constant 0 : index
    %5 = vector.load %arg3[%c0_6, %c1, %c0_7, %c0_8] : memref<1x4x8x306xbf16, #tpu.memory_space<vmem>>, vector<1x1x8x272xbf16>
    %6 = vector.shape_cast %5 : vector<1x1x8x272xbf16> to vector<8x272xbf16>
    %c1_9 = arith.constant 1 : index
    %c0_10 = arith.constant 0 : index
    %c0_11 = arith.constant 0 : index
    %7 = vector.load %arg1[%c1_9, %c0_10, %c0_11] : memref<9x16x8xbf16, #tpu.memory_space<vmem>>, vector<1x16x8xbf16>
    %8 = vector.shape_cast %7 : vector<1x16x8xbf16> to vector<16x8xbf16>
    %cst_12 = arith.constant dense<0.000000e+00> : vector<16x272xf32>
    %9 = tpu.matmul %8, %6, %cst_12 {dimension_numbers = #tpu.dot_dimension_numbers<[1], [0], [0], [1], [0, 0, 1, 1], [], []>} : vector<16x8xbf16>, vector<8x272xbf16>, vector<16x272xf32> -> vector<16x272xf32>
    %10 = arith.addf %4, %9 : vector<16x272xf32>
    %c0_13 = arith.constant 0 : index
    %c0_14 = arith.constant 0 : index
    %c0_15 = arith.constant 0 : index
    %c1_16 = arith.constant 1 : index
    %11 = vector.load %arg3[%c0_13, %c0_14, %c0_15, %c1_16] : memref<1x4x8x306xbf16, #tpu.memory_space<vmem>>, vector<1x1x8x272xbf16>
    %12 = vector.shape_cast %11 : vector<1x1x8x272xbf16> to vector<8x272xbf16>
    %c2 = arith.constant 2 : index
    %c0_17 = arith.constant 0 : index
    %c0_18 = arith.constant 0 : index
    %13 = vector.load %arg1[%c2, %c0_17, %c0_18] : memref<9x16x8xbf16, #tpu.memory_space<vmem>>, vector<1x16x8xbf16>
    %14 = vector.shape_cast %13 : vector<1x16x8xbf16> to vector<16x8xbf16>
    %cst_19 = arith.constant dense<0.000000e+00> : vector<16x272xf32>
    %15 = tpu.matmul %14, %12, %cst_19 {dimension_numbers = #tpu.dot_dimension_numbers<[1], [0], [0], [1], [0, 0, 1, 1], [], []>} : vector<16x8xbf16>, vector<8x272xbf16>, vector<16x272xf32> -> vector<16x272xf32>
    %16 = arith.addf %10, %15 : vector<16x272xf32>
    %c0_20 = arith.constant 0 : index
    %c2_21 = arith.constant 2 : index
    %c0_22 = arith.constant 0 : index
    %c0_23 = arith.constant 0 : index
    %17 = vector.load %arg3[%c0_20, %c2_21, %c0_22, %c0_23] : memref<1x4x8x306xbf16, #tpu.memory_space<vmem>>, vector<1x1x8x272xbf16>
    %18 = vector.shape_cast %17 : vector<1x1x8x272xbf16> to vector<8x272xbf16>
    %c3 = arith.constant 3 : index
    %c0_24 = arith.constant 0 : index
    %c0_25 = arith.constant 0 : index
    %19 = vector.load %arg1[%c3, %c0_24, %c0_25] : memref<9x16x8xbf16, #tpu.memory_space<vmem>>, vector<1x16x8xbf16>
    %20 = vector.shape_cast %19 : vector<1x16x8xbf16> to vector<16x8xbf16>
    %cst_26 = arith.constant dense<0.000000e+00> : vector<16x272xf32>
    %21 = tpu.matmul %20, %18, %cst_26 {dimension_numbers = #tpu.dot_dimension_numbers<[1], [0], [0], [1], [0, 0, 1, 1], [], []>} : vector<16x8xbf16>, vector<8x272xbf16>, vector<16x272xf32> -> vector<16x272xf32>
    %22 = arith.addf %16, %21 : vector<16x272xf32>
    %c0_27 = arith.constant 0 : index
    %c3_28 = arith.constant 3 : index
    %c0_29 = arith.constant 0 : index
    %c0_30 = arith.constant 0 : index
    %23 = vector.load %arg3[%c0_27, %c3_28, %c0_29, %c0_30] : memref<1x4x8x306xbf16, #tpu.memory_space<vmem>>, vector<1x1x8x272xbf16>
    %24 = vector.shape_cast %23 : vector<1x1x8x272xbf16> to vector<8x272xbf16>
    %c4 = arith.constant 4 : index
    %c0_31 = arith.constant 0 : index
    %c0_32 = arith.constant 0 : index
    %25 = vector.load %arg1[%c4, %c0_31, %c0_32] : memref<9x16x8xbf16, #tpu.memory_space<vmem>>, vector<1x16x8xbf16>
    %26 = vector.shape_cast %25 : vector<1x16x8xbf16> to vector<16x8xbf16>
    %cst_33 = arith.constant dense<0.000000e+00> : vector<16x272xf32>
    %27 = tpu.matmul %26, %24, %cst_33 {dimension_numbers = #tpu.dot_dimension_numbers<[1], [0], [0], [1], [0, 0, 1, 1], [], []>} : vector<16x8xbf16>, vector<8x272xbf16>, vector<16x272xf32> -> vector<16x272xf32>
    %28 = arith.addf %22, %27 : vector<16x272xf32>
    %c0_34 = arith.constant 0 : index
    %c2_35 = arith.constant 2 : index
    %c0_36 = arith.constant 0 : index
    %c1_37 = arith.constant 1 : index
    %29 = vector.load %arg3[%c0_34, %c2_35, %c0_36, %c1_37] : memref<1x4x8x306xbf16, #tpu.memory_space<vmem>>, vector<1x1x8x272xbf16>
    %30 = vector.shape_cast %29 : vector<1x1x8x272xbf16> to vector<8x272xbf16>
    %c5 = arith.constant 5 : index
    %c0_38 = arith.constant 0 : index
    %c0_39 = arith.constant 0 : index
    %31 = vector.load %arg1[%c5, %c0_38, %c0_39] : memref<9x16x8xbf16, #tpu.memory_space<vmem>>, vector<1x16x8xbf16>
    %32 = vector.shape_cast %31 : vector<1x16x8xbf16> to vector<16x8xbf16>
    %cst_40 = arith.constant dense<0.000000e+00> : vector<16x272xf32>
    %33 = tpu.matmul %32, %30, %cst_40 {dimension_numbers = #tpu.dot_dimension_numbers<[1], [0], [0], [1], [0, 0, 1, 1], [], []>} : vector<16x8xbf16>, vector<8x272xbf16>, vector<16x272xf32> -> vector<16x272xf32>
    %34 = arith.addf %28, %33 : vector<16x272xf32>
    %c0_41 = arith.constant 0 : index
    %c0_42 = arith.constant 0 : index
    %c0_43 = arith.constant 0 : index
    %c17 = arith.constant 17 : index
    %35 = vector.load %arg3[%c0_41, %c0_42, %c0_43, %c17] : memref<1x4x8x306xbf16, #tpu.memory_space<vmem>>, vector<1x1x8x272xbf16>
    %36 = vector.shape_cast %35 : vector<1x1x8x272xbf16> to vector<8x272xbf16>
    %c6 = arith.constant 6 : index
    %c0_44 = arith.constant 0 : index
    %c0_45 = arith.constant 0 : index
    %37 = vector.load %arg1[%c6, %c0_44, %c0_45] : memref<9x16x8xbf16, #tpu.memory_space<vmem>>, vector<1x16x8xbf16>
    %38 = vector.shape_cast %37 : vector<1x16x8xbf16> to vector<16x8xbf16>
    %cst_46 = arith.constant dense<0.000000e+00> : vector<16x272xf32>
    %39 = tpu.matmul %38, %36, %cst_46 {dimension_numbers = #tpu.dot_dimension_numbers<[1], [0], [0], [1], [0, 0, 1, 1], [], []>} : vector<16x8xbf16>, vector<8x272xbf16>, vector<16x272xf32> -> vector<16x272xf32>
    %40 = arith.addf %34, %39 : vector<16x272xf32>
    %c0_47 = arith.constant 0 : index
    %c1_48 = arith.constant 1 : index
    %c0_49 = arith.constant 0 : index
    %c17_50 = arith.constant 17 : index
    %41 = vector.load %arg3[%c0_47, %c1_48, %c0_49, %c17_50] : memref<1x4x8x306xbf16, #tpu.memory_space<vmem>>, vector<1x1x8x272xbf16>
    %42 = vector.shape_cast %41 : vector<1x1x8x272xbf16> to vector<8x272xbf16>
    %c7 = arith.constant 7 : index
    %c0_51 = arith.constant 0 : index
    %c0_52 = arith.constant 0 : index
    %43 = vector.load %arg1[%c7, %c0_51, %c0_52] : memref<9x16x8xbf16, #tpu.memory_space<vmem>>, vector<1x16x8xbf16>
    %44 = vector.shape_cast %43 : vector<1x16x8xbf16> to vector<16x8xbf16>
    %cst_53 = arith.constant dense<0.000000e+00> : vector<16x272xf32>
    %45 = tpu.matmul %44, %42, %cst_53 {dimension_numbers = #tpu.dot_dimension_numbers<[1], [0], [0], [1], [0, 0, 1, 1], [], []>} : vector<16x8xbf16>, vector<8x272xbf16>, vector<16x272xf32> -> vector<16x272xf32>
    %46 = arith.addf %40, %45 : vector<16x272xf32>
    %c0_54 = arith.constant 0 : index
    %c0_55 = arith.constant 0 : index
    %c0_56 = arith.constant 0 : index
    %c18 = arith.constant 18 : index
    %47 = vector.load %arg3[%c0_54, %c0_55, %c0_56, %c18] : memref<1x4x8x306xbf16, #tpu.memory_space<vmem>>, vector<1x1x8x272xbf16>
    %48 = vector.shape_cast %47 : vector<1x1x8x272xbf16> to vector<8x272xbf16>
    %c8 = arith.constant 8 : index
    %c0_57 = arith.constant 0 : index
    %c0_58 = arith.constant 0 : index
    %49 = vector.load %arg1[%c8, %c0_57, %c0_58] : memref<9x16x8xbf16, #tpu.memory_space<vmem>>, vector<1x16x8xbf16>
    %50 = vector.shape_cast %49 : vector<1x16x8xbf16> to vector<16x8xbf16>
    %cst_59 = arith.constant dense<0.000000e+00> : vector<16x272xf32>
    %51 = tpu.matmul %50, %48, %cst_59 {dimension_numbers = #tpu.dot_dimension_numbers<[1], [0], [0], [1], [0, 0, 1, 1], [], []>} : vector<16x8xbf16>, vector<8x272xbf16>, vector<16x272xf32> -> vector<16x272xf32>
    %52 = arith.addf %46, %51 : vector<16x272xf32>
    %c0_60 = arith.constant 0 : index
    %c0_61 = arith.constant 0 : index
    %53 = vector.load %arg2[%c0_60, %c0_61] : memref<16x1xf32, #tpu.memory_space<vmem>>, vector<16x1xf32>
    %54 = vector.broadcast %53 : vector<16x1xf32> to vector<16x272xf32>
    %55 = arith.addf %52, %54 : vector<16x272xf32>
    %cst_62 = arith.constant 0.000000e+00 : f32
    %56 = vector.broadcast %cst_62 : f32 to vector<16x272xf32>
    %57 = arith.subf %56, %55 : vector<16x272xf32>
    %58 = math.exp %57 : vector<16x272xf32>
    %cst_63 = arith.constant 1.000000e+00 : f32
    %59 = vector.broadcast %cst_63 : f32 to vector<16x272xf32>
    %60 = arith.addf %59, %58 : vector<16x272xf32>
    %61 = tpu.reciprocal %60 {approx = true} : vector<16x272xf32> -> vector<16x272xf32>
    %62 = arith.mulf %55, %61 : vector<16x272xf32>
    %63 = arith.truncf %62 : vector<16x272xf32> to vector<16x272xbf16>
    %c0_64 = arith.constant 0 : index
    %c0_65 = arith.constant 0 : index
    %c0_66 = arith.constant 0 : index
    %64 = vector.load %arg4[%c0_64, %c0_65, %c0_66] : memref<1x16x272xbf16, #tpu.memory_space<vmem>>, vector<1x16x272xbf16>
    %65 = vector.shape_cast %64 : vector<1x16x272xbf16> to vector<16x272xbf16>
    %66 = vector.shape_cast %63 : vector<16x272xbf16> to vector<1x16x272xbf16>
    tpu.vector_store %arg4[%c0_64, %c0_65, %c0_66], %66 {strides = array<i32>} : memref<1x16x272xbf16, #tpu.memory_space<vmem>>, vector<1x16x272xbf16>,
    return
  }
  func.func @transform_0(%arg0: i32) -> (i32, i32, i32) {
    %c0_i32 = arith.constant 0 : i32
    %c0_i32_0 = arith.constant 0 : i32
    %c0_i32_1 = arith.constant 0 : i32
    %c0_i32_2 = arith.constant 0 : i32
    return %c0_i32, %c0_i32_0, %c0_i32_1 : i32, i32, i32
  }
  func.func @transform_1(%arg0: i32) -> (i32, i32) {
    %c0_i32 = arith.constant 0 : i32
    %c0_i32_0 = arith.constant 0 : i32
    %c0_i32_1 = arith.constant 0 : i32
    return %c0_i32, %c0_i32_0 : i32, i32
  }
  func.func @transform_2(%arg0: i32) -> (i32, i32, i32, i32) {
    %c0_i32 = arith.constant 0 : i32
    %c0_i32_0 = arith.constant 0 : i32
    %c0_i32_1 = arith.constant 0 : i32
    %c0_i32_2 = arith.constant 0 : i32
    return %arg0, %c0_i32, %c0_i32_0, %c0_i32_1 : i32, i32, i32, i32
  }
  func.func @transform_3(%arg0: i32) -> (i32, i32, i32) {
    %c0_i32 = arith.constant 0 : i32
    %c0_i32_0 = arith.constant 0 : i32
    %c0_i32_1 = arith.constant 0 : i32
    return %arg0, %c0_i32, %c0_i32_0 : i32, i32, i32
  }
}

module attributes {stable_mosaic.version = 11 : i64} {
  func.func @_conv3x3s2_silu_kernel(%arg0: i32, %arg1: memref<9x32x16xbf16, #tpu.memory_space<vmem>>, %arg2: memref<32x1xf32, #tpu.memory_space<vmem>>, %arg3: memref<1x4x16x90xbf16, #tpu.memory_space<vmem>>, %arg4: memref<1x32x72xf32, #tpu.memory_space<vmem>>) attributes {dimension_semantics = [#tpu.dimension_semantics<parallel>], iteration_bounds = array<i64: 2>, scalar_prefetch = 0 : i64, scratch_operands = 0 : i64, tpu.core_type = #tpu.core_type<tc>, window_params = [{pipeline_mode = #tpu.pipeline_mode<synchronous>, transform_indices = @transform_0, window_bounds = array<i64: 9, 32, 16>}, {pipeline_mode = #tpu.pipeline_mode<synchronous>, transform_indices = @transform_1, window_bounds = array<i64: 32, 1>}, {transform_indices = @transform_2, window_bounds = array<i64: 1, 4, 16, 90>}, {transform_indices = @transform_3, window_bounds = array<i64: 1, 32, 72>}]} {
    %c0 = arith.constant 0 : index
    %c0_0 = arith.constant 0 : index
    %c0_1 = arith.constant 0 : index
    %c0_2 = arith.constant 0 : index
    %0 = vector.load %arg3[%c0, %c0_0, %c0_1, %c0_2] : memref<1x4x16x90xbf16, #tpu.memory_space<vmem>>, vector<1x1x16x72xbf16>
    %1 = vector.shape_cast %0 : vector<1x1x16x72xbf16> to vector<16x72xbf16>
    %c0_3 = arith.constant 0 : index
    %c0_4 = arith.constant 0 : index
    %c0_5 = arith.constant 0 : index
    %2 = vector.load %arg1[%c0_3, %c0_4, %c0_5] : memref<9x32x16xbf16, #tpu.memory_space<vmem>>, vector<1x32x16xbf16>
    %3 = vector.shape_cast %2 : vector<1x32x16xbf16> to vector<32x16xbf16>
    %cst = arith.constant dense<0.000000e+00> : vector<32x72xf32>
    %4 = tpu.matmul %3, %1, %cst {dimension_numbers = #tpu.dot_dimension_numbers<[1], [0], [0], [1], [0, 0, 1, 1], [], []>} : vector<32x16xbf16>, vector<16x72xbf16>, vector<32x72xf32> -> vector<32x72xf32>
    %c0_6 = arith.constant 0 : index
    %c1 = arith.constant 1 : index
    %c0_7 = arith.constant 0 : index
    %c0_8 = arith.constant 0 : index
    %5 = vector.load %arg3[%c0_6, %c1, %c0_7, %c0_8] : memref<1x4x16x90xbf16, #tpu.memory_space<vmem>>, vector<1x1x16x72xbf16>
    %6 = vector.shape_cast %5 : vector<1x1x16x72xbf16> to vector<16x72xbf16>
    %c1_9 = arith.constant 1 : index
    %c0_10 = arith.constant 0 : index
    %c0_11 = arith.constant 0 : index
    %7 = vector.load %arg1[%c1_9, %c0_10, %c0_11] : memref<9x32x16xbf16, #tpu.memory_space<vmem>>, vector<1x32x16xbf16>
    %8 = vector.shape_cast %7 : vector<1x32x16xbf16> to vector<32x16xbf16>
    %cst_12 = arith.constant dense<0.000000e+00> : vector<32x72xf32>
    %9 = tpu.matmul %8, %6, %cst_12 {dimension_numbers = #tpu.dot_dimension_numbers<[1], [0], [0], [1], [0, 0, 1, 1], [], []>} : vector<32x16xbf16>, vector<16x72xbf16>, vector<32x72xf32> -> vector<32x72xf32>
    %10 = arith.addf %4, %9 : vector<32x72xf32>
    %c0_13 = arith.constant 0 : index
    %c0_14 = arith.constant 0 : index
    %c0_15 = arith.constant 0 : index
    %c1_16 = arith.constant 1 : index
    %11 = vector.load %arg3[%c0_13, %c0_14, %c0_15, %c1_16] : memref<1x4x16x90xbf16, #tpu.memory_space<vmem>>, vector<1x1x16x72xbf16>
    %12 = vector.shape_cast %11 : vector<1x1x16x72xbf16> to vector<16x72xbf16>
    %c2 = arith.constant 2 : index
    %c0_17 = arith.constant 0 : index
    %c0_18 = arith.constant 0 : index
    %13 = vector.load %arg1[%c2, %c0_17, %c0_18] : memref<9x32x16xbf16, #tpu.memory_space<vmem>>, vector<1x32x16xbf16>
    %14 = vector.shape_cast %13 : vector<1x32x16xbf16> to vector<32x16xbf16>
    %cst_19 = arith.constant dense<0.000000e+00> : vector<32x72xf32>
    %15 = tpu.matmul %14, %12, %cst_19 {dimension_numbers = #tpu.dot_dimension_numbers<[1], [0], [0], [1], [0, 0, 1, 1], [], []>} : vector<32x16xbf16>, vector<16x72xbf16>, vector<32x72xf32> -> vector<32x72xf32>
    %16 = arith.addf %10, %15 : vector<32x72xf32>
    %c0_20 = arith.constant 0 : index
    %c2_21 = arith.constant 2 : index
    %c0_22 = arith.constant 0 : index
    %c0_23 = arith.constant 0 : index
    %17 = vector.load %arg3[%c0_20, %c2_21, %c0_22, %c0_23] : memref<1x4x16x90xbf16, #tpu.memory_space<vmem>>, vector<1x1x16x72xbf16>
    %18 = vector.shape_cast %17 : vector<1x1x16x72xbf16> to vector<16x72xbf16>
    %c3 = arith.constant 3 : index
    %c0_24 = arith.constant 0 : index
    %c0_25 = arith.constant 0 : index
    %19 = vector.load %arg1[%c3, %c0_24, %c0_25] : memref<9x32x16xbf16, #tpu.memory_space<vmem>>, vector<1x32x16xbf16>
    %20 = vector.shape_cast %19 : vector<1x32x16xbf16> to vector<32x16xbf16>
    %cst_26 = arith.constant dense<0.000000e+00> : vector<32x72xf32>
    %21 = tpu.matmul %20, %18, %cst_26 {dimension_numbers = #tpu.dot_dimension_numbers<[1], [0], [0], [1], [0, 0, 1, 1], [], []>} : vector<32x16xbf16>, vector<16x72xbf16>, vector<32x72xf32> -> vector<32x72xf32>
    %22 = arith.addf %16, %21 : vector<32x72xf32>
    %c0_27 = arith.constant 0 : index
    %c3_28 = arith.constant 3 : index
    %c0_29 = arith.constant 0 : index
    %c0_30 = arith.constant 0 : index
    %23 = vector.load %arg3[%c0_27, %c3_28, %c0_29, %c0_30] : memref<1x4x16x90xbf16, #tpu.memory_space<vmem>>, vector<1x1x16x72xbf16>
    %24 = vector.shape_cast %23 : vector<1x1x16x72xbf16> to vector<16x72xbf16>
    %c4 = arith.constant 4 : index
    %c0_31 = arith.constant 0 : index
    %c0_32 = arith.constant 0 : index
    %25 = vector.load %arg1[%c4, %c0_31, %c0_32] : memref<9x32x16xbf16, #tpu.memory_space<vmem>>, vector<1x32x16xbf16>
    %26 = vector.shape_cast %25 : vector<1x32x16xbf16> to vector<32x16xbf16>
    %cst_33 = arith.constant dense<0.000000e+00> : vector<32x72xf32>
    %27 = tpu.matmul %26, %24, %cst_33 {dimension_numbers = #tpu.dot_dimension_numbers<[1], [0], [0], [1], [0, 0, 1, 1], [], []>} : vector<32x16xbf16>, vector<16x72xbf16>, vector<32x72xf32> -> vector<32x72xf32>
    %28 = arith.addf %22, %27 : vector<32x72xf32>
    %c0_34 = arith.constant 0 : index
    %c2_35 = arith.constant 2 : index
    %c0_36 = arith.constant 0 : index
    %c1_37 = arith.constant 1 : index
    %29 = vector.load %arg3[%c0_34, %c2_35, %c0_36, %c1_37] : memref<1x4x16x90xbf16, #tpu.memory_space<vmem>>, vector<1x1x16x72xbf16>
    %30 = vector.shape_cast %29 : vector<1x1x16x72xbf16> to vector<16x72xbf16>
    %c5 = arith.constant 5 : index
    %c0_38 = arith.constant 0 : index
    %c0_39 = arith.constant 0 : index
    %31 = vector.load %arg1[%c5, %c0_38, %c0_39] : memref<9x32x16xbf16, #tpu.memory_space<vmem>>, vector<1x32x16xbf16>
    %32 = vector.shape_cast %31 : vector<1x32x16xbf16> to vector<32x16xbf16>
    %cst_40 = arith.constant dense<0.000000e+00> : vector<32x72xf32>
    %33 = tpu.matmul %32, %30, %cst_40 {dimension_numbers = #tpu.dot_dimension_numbers<[1], [0], [0], [1], [0, 0, 1, 1], [], []>} : vector<32x16xbf16>, vector<16x72xbf16>, vector<32x72xf32> -> vector<32x72xf32>
    %34 = arith.addf %28, %33 : vector<32x72xf32>
    %c0_41 = arith.constant 0 : index
    %c0_42 = arith.constant 0 : index
    %c0_43 = arith.constant 0 : index
    %c9 = arith.constant 9 : index
    %35 = vector.load %arg3[%c0_41, %c0_42, %c0_43, %c9] : memref<1x4x16x90xbf16, #tpu.memory_space<vmem>>, vector<1x1x16x72xbf16>
    %36 = vector.shape_cast %35 : vector<1x1x16x72xbf16> to vector<16x72xbf16>
    %c6 = arith.constant 6 : index
    %c0_44 = arith.constant 0 : index
    %c0_45 = arith.constant 0 : index
    %37 = vector.load %arg1[%c6, %c0_44, %c0_45] : memref<9x32x16xbf16, #tpu.memory_space<vmem>>, vector<1x32x16xbf16>
    %38 = vector.shape_cast %37 : vector<1x32x16xbf16> to vector<32x16xbf16>
    %cst_46 = arith.constant dense<0.000000e+00> : vector<32x72xf32>
    %39 = tpu.matmul %38, %36, %cst_46 {dimension_numbers = #tpu.dot_dimension_numbers<[1], [0], [0], [1], [0, 0, 1, 1], [], []>} : vector<32x16xbf16>, vector<16x72xbf16>, vector<32x72xf32> -> vector<32x72xf32>
    %40 = arith.addf %34, %39 : vector<32x72xf32>
    %c0_47 = arith.constant 0 : index
    %c1_48 = arith.constant 1 : index
    %c0_49 = arith.constant 0 : index
    %c9_50 = arith.constant 9 : index
    %41 = vector.load %arg3[%c0_47, %c1_48, %c0_49, %c9_50] : memref<1x4x16x90xbf16, #tpu.memory_space<vmem>>, vector<1x1x16x72xbf16>
    %42 = vector.shape_cast %41 : vector<1x1x16x72xbf16> to vector<16x72xbf16>
    %c7 = arith.constant 7 : index
    %c0_51 = arith.constant 0 : index
    %c0_52 = arith.constant 0 : index
    %43 = vector.load %arg1[%c7, %c0_51, %c0_52] : memref<9x32x16xbf16, #tpu.memory_space<vmem>>, vector<1x32x16xbf16>
    %44 = vector.shape_cast %43 : vector<1x32x16xbf16> to vector<32x16xbf16>
    %cst_53 = arith.constant dense<0.000000e+00> : vector<32x72xf32>
    %45 = tpu.matmul %44, %42, %cst_53 {dimension_numbers = #tpu.dot_dimension_numbers<[1], [0], [0], [1], [0, 0, 1, 1], [], []>} : vector<32x16xbf16>, vector<16x72xbf16>, vector<32x72xf32> -> vector<32x72xf32>
    %46 = arith.addf %40, %45 : vector<32x72xf32>
    %c0_54 = arith.constant 0 : index
    %c0_55 = arith.constant 0 : index
    %c0_56 = arith.constant 0 : index
    %c10 = arith.constant 10 : index
    %47 = vector.load %arg3[%c0_54, %c0_55, %c0_56, %c10] : memref<1x4x16x90xbf16, #tpu.memory_space<vmem>>, vector<1x1x16x72xbf16>
    %48 = vector.shape_cast %47 : vector<1x1x16x72xbf16> to vector<16x72xbf16>
    %c8 = arith.constant 8 : index
    %c0_57 = arith.constant 0 : index
    %c0_58 = arith.constant 0 : index
    %49 = vector.load %arg1[%c8, %c0_57, %c0_58] : memref<9x32x16xbf16, #tpu.memory_space<vmem>>, vector<1x32x16xbf16>
    %50 = vector.shape_cast %49 : vector<1x32x16xbf16> to vector<32x16xbf16>
    %cst_59 = arith.constant dense<0.000000e+00> : vector<32x72xf32>
    %51 = tpu.matmul %50, %48, %cst_59 {dimension_numbers = #tpu.dot_dimension_numbers<[1], [0], [0], [1], [0, 0, 1, 1], [], []>} : vector<32x16xbf16>, vector<16x72xbf16>, vector<32x72xf32> -> vector<32x72xf32>
    %52 = arith.addf %46, %51 : vector<32x72xf32>
    %c0_60 = arith.constant 0 : index
    %c0_61 = arith.constant 0 : index
    %53 = vector.load %arg2[%c0_60, %c0_61] : memref<32x1xf32, #tpu.memory_space<vmem>>, vector<32x1xf32>
    %54 = vector.broadcast %53 : vector<32x1xf32> to vector<32x72xf32>
    %55 = arith.addf %52, %54 : vector<32x72xf32>
    %cst_62 = arith.constant 0.000000e+00 : f32
    %56 = vector.broadcast %cst_62 : f32 to vector<32x72xf32>
    %57 = arith.subf %56, %55 : vector<32x72xf32>
    %58 = math.exp %57 : vector<32x72xf32>
    %cst_63 = arith.constant 1.000000e+00 : f32
    %59 = vector.broadcast %cst_63 : f32 to vector<32x72xf32>
    %60 = arith.addf %59, %58 : vector<32x72xf32>
    %61 = tpu.reciprocal %60 {approx = true} : vector<32x72xf32> -> vector<32x72xf32>
    %62 = arith.mulf %55, %61 : vector<32x72xf32>
    %c0_64 = arith.constant 0 : index
    %c0_65 = arith.constant 0 : index
    %c0_66 = arith.constant 0 : index
    %63 = vector.load %arg4[%c0_64, %c0_65, %c0_66] : memref<1x32x72xf32, #tpu.memory_space<vmem>>, vector<1x32x72xf32>
    %64 = vector.shape_cast %63 : vector<1x32x72xf32> to vector<32x72xf32>
    %65 = vector.shape_cast %62 : vector<32x72xf32> to vector<1x32x72xf32>
    tpu.vector_store %arg4[%c0_64, %c0_65, %c0_66], %65 {strides = array<i32>} : memref<1x32x72xf32, #tpu.memory_space<vmem>>, vector<1x32x72xf32>,
    return
  }
  func.func @transform_0(%arg0: i32) -> (i32, i32, i32) {
    %c0_i32 = arith.constant 0 : i32
    %c0_i32_0 = arith.constant 0 : i32
    %c0_i32_1 = arith.constant 0 : i32
    %c0_i32_2 = arith.constant 0 : i32
    return %c0_i32, %c0_i32_0, %c0_i32_1 : i32, i32, i32
  }
  func.func @transform_1(%arg0: i32) -> (i32, i32) {
    %c0_i32 = arith.constant 0 : i32
    %c0_i32_0 = arith.constant 0 : i32
    %c0_i32_1 = arith.constant 0 : i32
    return %c0_i32, %c0_i32_0 : i32, i32
  }
  func.func @transform_2(%arg0: i32) -> (i32, i32, i32, i32) {
    %c0_i32 = arith.constant 0 : i32
    %c0_i32_0 = arith.constant 0 : i32
    %c0_i32_1 = arith.constant 0 : i32
    %c0_i32_2 = arith.constant 0 : i32
    return %arg0, %c0_i32, %c0_i32_0, %c0_i32_1 : i32, i32, i32, i32
  }
  func.func @transform_3(%arg0: i32) -> (i32, i32, i32) {
    %c0_i32 = arith.constant 0 : i32
    %c0_i32_0 = arith.constant 0 : i32
    %c0_i32_1 = arith.constant 0 : i32
    return %arg0, %c0_i32, %c0_i32_0 : i32, i32, i32
  }
}

</mosaic_0001>

<bundles_post_ra>
// kernel: _model.2
= control target key start
LH: loop header
LB: loop body
LE: loop exit
PB: predicated region body
PF: predicated region fallthrough
CT: control target
= control target key end

     0   :  { %s1659_s12 = smov 0   ;;  %s1824_s0 = inlined_call_operand.vmem [shape: bf16[9,16,8], index: 0, kind: input, shape index: {}]   ;;  %s1825_s1 = inlined_call_operand.vmem [shape: f32[16,1], index: 1, kind: input, shape index: {}]   ;;  %s1826_s2 = inlined_call_operand.vmem [shape: bf16[2,4,8,306], index: 2, kind: input, shape index: {}]   ;;  %s1827_s3 = inlined_call_operand.vmem [shape: bf16[2,16,272], index: 3, kind: output, shape index: {}]  }
   0x1 LB: > { %s1371_s13 = sadd.s32 4294967295, %s1631_s12   ;;  %p1375_p0 = scmp.ge.s32.totalorder %s1631_s12, 1  ;;  %s1631_s12 = sphi %s1659_s12, %s13_s12  }
   0x2   : > { %p137_p1 = scmp.lt.s32.totalorder %s1631_s12, 3 }
   0x4   : > { %p138_p2 = pnand %p1375_p0, %p137_p1 }
   0x5   : > { %p161_p3 = scmp.lt.s32.totalorder (!%p138_p2), %s1371_s13, 1  ;;  %v1633_v0 = vmov (!%p138_p2), 0   ;;  %v1634_v1 = vmov (!%p138_p2), 0.0   ;;  %vm1635_vm0 = vmmov (!%p138_p2), 0   ;;  %s1636_s18 = smov (!%p138_p2), 127   ;;  %vm199_vm1 = vcmask (!%p138_p2), 1043456  }
   0x6   : > { %141 = sbr.rel (%p138_p2) target bundleno = 466 (0x1d2), region = 32  ;;  %241 = vmatprep.mubr.bf16.mxu0 (!%p138_p2), %v1633_v0  ;;  %1476 = vmatprep.subr.bf16.mxu1 (!%p138_p2), %v1634_v1  ;;  %v1589_v12 = vld [vmem:[%s1824_s0 + $0x8] sm:$0xff] (!%p138_p2)   ;;  %vm195_vm2 = vcmask (!%p138_p2), 64512   ;;  %v1590_v19 = vld [vmem:[%s1824_s0] sm:$0xff] (!%p138_p2)   ;;  %s1637_s23 = smov (!%p138_p2), 111   ;;  %v1591_v25 = vld [vmem:[%s1824_s0 + $0x10] sm:$0xff] (!%p138_p2)  }
   0x7   : > { %1578 = vset.pattern.permute.xlu1 (!%p138_p2), %v1633_v0  ;;  %1579 = vset.pattern.permute.xlu0 (!%p138_p2), %v1633_v0  ;;  %s1638_s24 = smov (!%p138_p2), 110   ;;  %v1237_v20 = vld [vmem:[%s1825_s1] sm:$0xff] (!%p138_p2)  ;;  %v1238_v21 = vld [vmem:[%s1825_s1 + $0x8] sm:$0xff] (!%p138_p2)  ;;  %vm416_vm3 = vcmask (!%p138_p2), 1039360   ;;  %v1592_v33 = vld [vmem:[%s1824_s0 + $0x18] sm:$0xff] (!%p138_p2)   ;;  %vm895_vm4 = vcmask (!%p138_p2), 908288  }
   0x8   : > { %1478 = vmatprep.mubr.msk.bf16.mxu1 (!%p138_p2), %vm1635_vm0, %v1634_v1  ;;  %v1594_v40 = vld [vmem:[%s1824_s0 + $0x20] sm:$0xff] (!%p138_p2)   ;;  %v1595_v48 = vld [vmem:[%s1824_s0 + $0x28] sm:$0xff] (!%p138_p2)   ;;  %v1598_v55 = vld [vmem:[%s1824_s0 + $0x30] sm:$0xff] (!%p138_p2)   ;;  %vm1132_vm5 = vcmask (!%p138_p2), 900096   ;;  %vm1312_vm6 = vcmask (!%p138_p2), 125952  }
   0x9   : > { %v1599_v60 = vld [vmem:[%s1824_s0 + $0x38] sm:$0xff] (!%p138_p2)  }
   0xd   : > { %s1829_s13 = smov (!%p161_p3, %s1371_s13), 1 }
   0xe   : > { %s1562_s14 = smul.u32 48, %s1829_s13 }
  0x10   : > { %s1679_s17 = scalar_lea.vmem %s1826_s2, %s1562_s14 }
  0x11   : > { %v1580_v2 = vld [vmem:[%s1679_s17 + $0x8] ss:$0 sps:$4 sm:$0xff]   ;;  %v172_v3 = vld [vmem:[%s1679_s17] sm:$0xff]  ;;  %v1402_v5 = vld [vmem:[%s1679_s17 + $0x18] sm:$0xff] }
  0x12   : > { %v1390_v4 = vcombine.low %v172_v3, %v172_v3  ;;  %414 = vrot.lane.b32.xlu1 %v1580_v2, %s1636_s18  ;;  %v1684_v6 = vcombine.low %v1402_v5, %v1402_v5  ;;  %v1378_v7 = vld [vmem:[%s1679_s17 + $0xc] sm:$0xff]  ;;  %v1587_v8 = vld [vmem:[%s1679_s17 + $0x14] ss:$0 sps:$4 sm:$0xff]   ;;  %v1391_v9 = vcombine.high %v172_v3, %v172_v3  ;;  %v1584_v13 = vld [vmem:[%s1679_s17 + $0x20] ss:$0 sps:$4 sm:$0xff]   ;;  %v316_v16 = vsel %vm199_vm1, %v1580_v2, 0 }
  0x13   : > { %v1383_v10 = vcombine.low %v1378_v7, %v1378_v7  ;;  %v1384_v11 = vcombine.high %v1378_v7, %v1378_v7  ;;  %v207_v14 = vsel %vm199_vm1, %v1587_v8, 0  ;;  %v1408_v17 = vcombine.high %v1402_v5, %v1402_v5  ;;  %v1413_v30 = vld [vmem:[%s1679_s17 + $0x24] sm:$0xff]  ;;  %v1593_v32 = vld [vmem:[%s1679_s17 + $0x2c] ss:$0 sps:$4 sm:$0xff]  }
  0x14   : > { %410 = vrot.lane.b32.xlu0 %v1390_v4, %s1636_s18  ;;  %1477 = vmatpush3.bf16.msra.mxu1 %v207_v14  ;;  %v310_v18 = vsel %vm199_vm1, %v1390_v4, 0  ;;  %v550_v26 = vsel %vm199_vm1, %v1584_v13, 0  ;;  %v544_v34 = vsel %vm199_vm1, %v1684_v6, 0  ;;  %v1419_v35 = vcombine.high %v1413_v30, %v1413_v30  ;;  %v1600_v3 = vld [vmem:[%s1824_s0 + $0x40] sm:$0xff]  }
  0x15   : > { %1386 = vmatprep.subr.msk.bf16.mxu0 %vm199_vm1, %v1384_v11  ;;  %v201_v15 = vsel %vm199_vm1, %v1383_v10, 0  ;;  %1482 = vmatprep.subr.bf16.mxu1 %v1634_v1  ;;  %v671_v37 = vsel %vm199_vm1, %v1593_v32, 0  ;;  %v1418_v41 = vcombine.low %v1413_v30, %v1413_v30 }
  0x16   : > { %771 = vrot.lane.b32.xlu1 %v1684_v6, %s1636_s18  ;;  %210 = vmatpush1.bf16.msra.mxu0 %v201_v15 }
  0x17   : > { %1479 = vmatmul.mubr.msk.bf16.vlgmr.msra.gmra.mrb[0].mxu1 %vm195_vm2, %v1589_v12  ;;  %1393 = vmatprep.subr.msk.bf16.mxu0 %vm199_vm1, %v1391_v9  ;;  %v665_v45 = vsel %vm199_vm1, %v1418_v41, 0 }
  0x18   : > { %412 = vrot.lane.b32.xlu0 %v1391_v9, %s1636_s18  ;;  %1483 = vmatpush3.bf16.msra.mxu1 %v316_v16 }
  0x19   : > { %1387 = vmatmul.mubr.msk.bf16.vlgmr.msra.gmra.mrb[0].mxu0 %vm195_vm2, %v1589_v12  ;;  %1484 = vmatprep.mubr.msk.bf16.mxu1 %vm1635_vm0, %v1634_v1 }
  0x1a   : > { %775 = vrot.lane.b32.xlu1 %v1584_v13, %s1636_s18  ;;  %319 = vmatpush1.bf16.msra.mxu0 %v310_v18 }
  0x1b   : > { %350 = vmatprep.mubr.bf16.mxu0 %v1633_v0  ;;  %1488 = vmatprep.subr.bf16.mxu1 %v1634_v1 }
  0x1c   : > { %773 = vrot.lane.b32.xlu0 %v1408_v17, %s1636_s18  ;;  %s1563_s18 = smul.u32 24, %s1829_s13 }
  0x1e   : > { %891 = vrot.lane.b32.xlu1 %v1391_v9, %s1637_s23  ;;  %s1815_s21 = scalar_lea.vmem %s1827_s3, %s1563_s18 }
  0x1f   : > { %1485 = vmatmul.mubr.msk.bf16.vlgmr.msra.gmra.mrb[4].mxu1 %vm195_vm2, %v1590_v19 }
  0x20   : > { %889 = vrot.lane.b32.xlu0 %v1390_v4, %s1637_s23  ;;  %1490 = vmatprep.mubr.msk.bf16.mxu1 %vm1635_vm0, %v1634_v1 }
  0x22   : > { %1008 = vrot.lane.b32.xlu1 %v1383_v10, %s1637_s23 }
  0x24   : > { %893 = vrot.lane.b32.xlu0 %v1580_v2, %s1637_s23 }
  0x25   : > { %1394 = vmatmul.mubr.msk.bf16.vlgmr.msra.gmra.mrb[0].mxu0 %vm195_vm2, %v1590_v19 }
  0x26   : > { %1012 = vrot.lane.b32.xlu1 %v1587_v8, %s1637_s23  ;;  %463 = vmatprep.mubr.bf16.mxu0 %v1633_v0 }
  0x28   : > { %1010 = vrot.lane.b32.xlu0 %v1384_v11, %s1637_s23 }
  0x2a   : > { %1128 = vrot.lane.b32.xlu1 %v1391_v9, %s1638_s24 }
  0x2c   : > { %1126 = vrot.lane.b32.xlu0 %v1390_v4, %s1638_s24 }
  0x2e   : > { %1241 = vperm.xlu1 %1578, %v1237_v20  }
  0x30   : > { %1130 = vrot.lane.b32.xlu0 %v1580_v2, %s1638_s24 }
  0x34   : > { %1246 = vperm.xlu0 %1579, %v1238_v21  }
  0x84   : > { %v415_v22 = vpop.permute.xlu1 %414 }
  0x85   : > { %v429_v23 = vsel %vm199_vm1, %v415_v22, 0 }
  0x86   : > { %v411_v24 = vpop.permute.xlu0 %410  ;;  %1489 = vmatpush3.bf16.msra.mxu1 %v429_v23 }
  0x87   : > { %1494 = vmatprep.subr.bf16.mxu1 %v1634_v1 }
  0x88   : > { %v772_v36 = vpop.permute.xlu1 %771 }
  0x89   : > { %1491 = vmatmul.mubr.msk.bf16.vlgmr.msra.gmra.mrb[8].mxu1 %vm195_vm2, %v1591_v25 }
  0x8a   : > { %v413_v27 = vpop.permute.xlu0 %412  ;;  %1495 = vmatpush3.bf16.msra.mxu1 %v550_v26  ;;  %1496 = vmatprep.mubr.msk.bf16.mxu1 %vm1635_vm0, %v1634_v1 }
  0x8b   : > { %v417_v28 = vsel %vm416_vm3, %v411_v24, %v413_v27  ;;  %v418_v29 = vsel %vm416_vm3, %v413_v27, %v415_v22  ;;  %1500 = vmatprep.subr.bf16.mxu1 %v1634_v1 }
  0x8c   : > { %v423_v31 = vsel %vm199_vm1, %v417_v28, 0  ;;  %1399 = vmatprep.subr.msk.bf16.mxu0 %vm199_vm1, %v418_v29  ;;  %v776_v39 = vpop.permute.xlu1 %775 }
  0x8d   : > { %432 = vmatpush1.bf16.msra.mxu0 %v423_v31  ;;  %v789_v43 = vsel %vm199_vm1, %v776_v39, 0 }
  0x8e   : > { %1410 = vmatprep.subr.msk.bf16.mxu0 %vm199_vm1, %v1408_v17  ;;  %v774_v38 = vpop.permute.xlu0 %773 }
  0x8f   : > { %v778_v46 = vsel %vm416_vm3, %v774_v38, %v776_v39  ;;  %v777_v52 = vsel %vm416_vm3, %v772_v36, %v774_v38 }
  0x90   : > { %1400 = vmatmul.mubr.msk.bf16.vlgmr.msra.gmra.mrb[0].mxu0 %vm195_vm2, %v1591_v25  ;;  %v892_v44 = vpop.permute.xlu1 %891  ;;  %v783_v54 = vsel %vm199_vm1, %v777_v52, 0 }
  0x91   : > { %553 = vmatpush1.bf16.msra.mxu0 %v544_v34  ;;  %584 = vmatprep.mubr.bf16.mxu0 %v1633_v0 }
  0x92   : > { %1497 = vmatmul.mubr.msk.bf16.vlgmr.msra.gmra.mrb[12].mxu1 %vm195_vm2, %v1592_v33  ;;  %1421 = vmatprep.subr.msk.bf16.mxu0 %vm199_vm1, %v1419_v35  ;;  %v890_v42 = vpop.permute.xlu0 %889 }
  0x93   : > { %1501 = vmatpush3.bf16.msra.mxu1 %v671_v37  ;;  %1502 = vmatprep.mubr.msk.bf16.mxu1 %vm1635_vm0, %v1634_v1  ;;  %v896_v61 = vsel %vm895_vm4, %v890_v42, %v892_v44 }
  0x94   : > { %1506 = vmatprep.subr.bf16.mxu1 %v1634_v1  ;;  %v1009_v49 = vpop.permute.xlu1 %1008  ;;  %v902_v63 = vsel %vm199_vm1, %v896_v61, 0 }
  0x96   : > { %v894_v47 = vpop.permute.xlu0 %893 }
  0x97   : > { %v908_v50 = vsel %vm199_vm1, %v894_v47, 0  ;;  %v897_v56 = vsel %vm895_vm4, %v892_v44, %v894_v47 }
  0x98   : > { %v1013_v53 = vpop.permute.xlu1 %1012 }
  0x99   : > { %v1026_v58 = vsel %vm199_vm1, %v1013_v53, 0 }
  0x9a   : > { %1503 = vmatmul.mubr.msk.bf16.vlgmr.msra.gmra.mrb[16].mxu1 %vm195_vm2, %v1594_v40  ;;  %v1011_v51 = vpop.permute.xlu0 %1010 }
  0x9b   : > { %1507 = vmatpush3.bf16.msra.mxu1 %v789_v43  ;;  %1508 = vmatprep.mubr.msk.bf16.mxu1 %vm1635_vm0, %v1634_v1  ;;  %v1015_v2 = vsel %vm895_vm4, %v1011_v51, %v1013_v53  ;;  %v1014_v4 = vsel %vm895_vm4, %v1009_v49, %v1011_v51 }
  0x9c   : > { %1411 = vmatmul.mubr.msk.bf16.vlgmr.msra.gmra.mrb[0].mxu0 %vm195_vm2, %v1592_v33  ;;  %1512 = vmatprep.subr.bf16.mxu1 %v1634_v1  ;;  %v1129_v5 = vpop.permute.xlu1 %1128  ;;  %v1020_v6 = vsel %vm199_vm1, %v1014_v4, 0 }
  0x9d   : > { %674 = vmatpush1.bf16.msra.mxu0 %v665_v45  ;;  %705 = vmatprep.mubr.bf16.mxu0 %v1633_v0 }
  0x9e   : > { %1427 = vmatprep.subr.msk.bf16.mxu0 %vm199_vm1, %v778_v46  ;;  %v1127_v57 = vpop.permute.xlu0 %1126 }
  0x9f   : > { %v1133_v7 = vsel %vm1132_vm5, %v1127_v57, %v1129_v5 }
  0xa0   : > { %v1139_v8 = vsel %vm199_vm1, %v1133_v7, 0 }
  0xa2   : > { %1509 = vmatmul.mubr.msk.bf16.vlgmr.msra.gmra.mrb[20].mxu1 %vm195_vm2, %v1595_v48  ;;  %v1131_v59 = vpop.permute.xlu0 %1130 }
  0xa3   : > { %1513 = vmatpush3.bf16.msra.mxu1 %v908_v50  ;;  %1514 = vmatprep.mubr.msk.bf16.mxu1 %vm1635_vm0, %v1634_v1  ;;  %v1145_v62 = vsel %vm199_vm1, %v1131_v59, 0 }
  0xa4   : > { %1518 = vmatprep.subr.bf16.mxu1 %v1634_v1 }
  0xa8   : > { %1422 = vmatmul.mubr.msk.bf16.vlgmr.msra.gmra.mrb[0].mxu0 %vm195_vm2, %v1594_v40 }
  0xa9   : > { %792 = vmatpush1.bf16.msra.mxu0 %v783_v54  ;;  %823 = vmatprep.mubr.bf16.mxu0 %v1633_v0 }
  0xaa   : > { %1515 = vmatmul.mubr.msk.bf16.vlgmr.msra.gmra.mrb[24].mxu1 %vm195_vm2, %v1598_v55  ;;  %1433 = vmatprep.subr.msk.bf16.mxu0 %vm199_vm1, %v897_v56 }
  0xab   : > { %1519 = vmatpush3.bf16.msra.mxu1 %v1026_v58  ;;  %1520 = vmatprep.mubr.msk.bf16.mxu1 %vm1635_vm0, %v1634_v1 }
  0xac   : > { %1524 = vmatprep.subr.bf16.mxu1 %v1634_v1 }
  0xb2   : > { %1521 = vmatmul.mubr.msk.bf16.vlgmr.msra.gmra.mrb[28].mxu1 %vm195_vm2, %v1599_v60 }
  0xb3   : > { %1525 = vmatpush3.bf16.msra.mxu1 %v1145_v62  ;;  %1526 = vmatprep.mubr.msk.bf16.mxu1 %vm1635_vm0, %v1634_v1  ;;  %v1134_v1 = vsel %vm1132_vm5, %v1129_v5, %v1131_v59  ;;  %v1247_v59 = vpop.permute.xlu0 %1246 }
  0xb4   : > { %1428 = vmatmul.mubr.msk.bf16.vlgmr.msra.gmra.mrb[0].mxu0 %vm195_vm2, %v1595_v48 }
  0xb5   : > { %911 = vmatpush1.bf16.msra.mxu0 %v902_v63  ;;  %942 = vmatprep.mubr.bf16.mxu0 %v1633_v0 }
  0xb6   : > { %1439 = vmatprep.subr.msk.bf16.mxu0 %vm199_vm1, %v1015_v2 }
  0xba   : > { %1527 = vmatmul.mubr.msk.bf16.vlgmr.msra.gmra.mrb[32].mxu1 %vm195_vm2, %v1600_v3 }
  0xc0   : > { %1434 = vmatmul.mubr.msk.bf16.vlgmr.msra.gmra.mrb[0].mxu0 %vm195_vm2, %v1598_v55  ;;  %v1242_v55 = vpop.permute.xlu1 %1241 }
  0xc1   : > { %1029 = vmatpush1.bf16.msra.mxu0 %v1020_v6  ;;  %1060 = vmatprep.mubr.bf16.mxu0 %v1633_v0 }
  0xc2   : > { %1445 = vmatprep.subr.msk.bf16.mxu0 %vm199_vm1, %v1134_v1 }
  0xcc   : > { %1440 = vmatmul.mubr.msk.bf16.vlgmr.msra.gmra.mrb[0].mxu0 %vm195_vm2, %v1599_v60 }
  0xcd   : > { %1148 = vmatpush1.bf16.msra.mxu0 %v1139_v8  ;;  %1179 = vmatprep.mubr.bf16.mxu0 %v1633_v0 }
  0xd8   : > { %1446 = vmatmul.mubr.msk.bf16.vlgmr.msra.gmra.mrb[0].mxu0 %vm195_vm2, %v1600_v3 }
  0xea   : > { %v286_v9 = vpop.f32.mrb[0].mxu1 }
  0xeb   : > { %v1480_v10 = vpop.f32.mrb[1].mxu1 }
  0xec   : > { %v289_v11 = vpop.f32.mrb[2].mxu1 }
  0xed   : > { %v1481_v12 = vpop.f32.mrb[3].mxu1 }
  0xf2   : > { %v395_v13 = vpop.f32.mrb[4].mxu1 }
  0xf3   : > { %v396_v14 = vadd.f32 %v395_v13, %v286_v9  ;;  %v1486_v15 = vpop.f32.mrb[5].mxu1 }
  0xf4   : > { %v398_v16 = vpop.f32.mrb[6].mxu1 }
  0xf5   : > { %v399_v17 = vadd.f32 %v398_v16, %v289_v11  ;;  %v1487_v18 = vpop.f32.mrb[7].mxu1 }
 0x15c   : > { %v508_v19 = vpop.f32.mrb[8].mxu1 }
 0x15d   : > { %v517_v20 = vadd.f32 %v508_v19, %v396_v14  ;;  %v1492_v21 = vpop.f32.mrb[9].mxu1 }
 0x15e   : > { %v511_v22 = vpop.f32.mrb[10].mxu1 }
 0x15f   : > { %v520_v23 = vadd.f32 %v511_v22, %v399_v17  ;;  %v1493_v24 = vpop.f32.mrb[11].mxu1 }
 0x165   : > { %v629_v25 = vpop.f32.mrb[12].mxu1 }
 0x166   : > { %v638_v0 = vadd.f32 %v629_v25, %v517_v20  ;;  %v1498_v26 = vpop.f32.mrb[13].mxu1 }
 0x167   : > { %v632_v27 = vpop.f32.mrb[14].mxu1 }
 0x168   : > { %v641_v28 = vadd.f32 %v632_v27, %v520_v23  ;;  %v1499_v29 = vpop.f32.mrb[15].mxu1 }
 0x16d   : > { %v750_v30 = vpop.f32.mrb[16].mxu1 }
 0x16e   : > { %v759_v31 = vadd.f32 %v750_v30, %v638_v0  ;;  %v1504_v32 = vpop.f32.mrb[17].mxu1 }
 0x16f   : > { %v753_v33 = vpop.f32.mrb[18].mxu1 }
 0x170   : > { %v762_v34 = vadd.f32 %v753_v33, %v641_v28  ;;  %v1505_v35 = vpop.f32.mrb[19].mxu1 }
 0x175   : > { %v868_v36 = vpop.f32.mrb[20].mxu1 }
 0x176   : > { %v877_v37 = vadd.f32 %v868_v36, %v759_v31  ;;  %v1510_v38 = vpop.f32.mrb[21].mxu1 }
 0x177   : > { %v871_v39 = vpop.f32.mrb[22].mxu1 }
 0x178   : > { %v880_v40 = vadd.f32 %v871_v39, %v762_v34  ;;  %v1511_v41 = vpop.f32.mrb[23].mxu1 }
 0x17d   : > { %v987_v42 = vpop.f32.mrb[24].mxu1 }
 0x17e   : > { %v996_v43 = vadd.f32 %v987_v42, %v877_v37  ;;  %v1516_v44 = vpop.f32.mrb[25].mxu1 }
 0x17f   : > { %v990_v45 = vpop.f32.mrb[26].mxu1 }
 0x180   : > { %v999_v46 = vadd.f32 %v990_v45, %v880_v40  ;;  %v1517_v47 = vpop.f32.mrb[27].mxu1 }
 0x185   : > { %v1105_v48 = vpop.f32.mrb[28].mxu1 }
 0x186   : > { %v1114_v49 = vadd.f32 %v1105_v48, %v996_v43  ;;  %v1522_v50 = vpop.f32.mrb[29].mxu1 }
 0x187   : > { %v1108_v51 = vpop.f32.mrb[30].mxu1 }
 0x188   : > { %v1117_v52 = vadd.f32 %v1108_v51, %v999_v46  ;;  %v1523_v53 = vpop.f32.mrb[31].mxu1 }
 0x18d   : > { %v1224_v54 = vpop.f32.mrb[32].mxu1 }
 0x18e   : > { %v1233_v56 = vadd.f32 %v1224_v54, %v1114_v49  ;;  %v1528_v57 = vpop.f32.mrb[33].mxu1 }
 0x18f   : > { %v1227_v58 = vpop.f32.mrb[34].mxu1 }
 0x190   : > { %v1251_v60 = vadd.f32 %v1242_v55, %v1233_v56  ;;  %v1236_v61 = vadd.f32 %v1227_v58, %v1117_v52  ;;  %v1529_v62 = vpop.f32.mrb[35].mxu1 }
 0x192   : > { %v1257_v63 = vsub.f32 0.0, %v1251_v60  ;;  %v1254_v2 = vadd.f32 %v1247_v59, %v1236_v61 }
 0x194   : > { %v1265_v3 = vmul.f32 1.442695, %v1257_v63  ;;  %v1260_v4 = vsub.f32 0.0, %v1254_v2 }
 0x196   : > { %1601 = vpow2.f32 %v1265_v3  ;;  %v1271_v5 = vmul.f32 1.442695, %v1260_v4 }
 0x198   : > { %1603 = vpow2.f32 %v1271_v5 }
 0x1a0   : > { %v1602_v6 = vpop.eup %1601 }
 0x1a1   : > { %v1275_v1 = vadd.f32 1.0, %v1602_v6 }
 0x1a2   : > { %v1604_v7 = vpop.eup %1603 }
 0x1a3   : > { %1605 = vrcp.f32 %v1275_v1  ;;  %v1278_v8 = vadd.f32 1.0, %v1604_v7 }
 0x1a5   : > { %1607 = vrcp.f32 %v1278_v8 }
 0x1ab   : > { %v1181_v9 = vpop.f32.mrb[0].mxu0 }
 0x1ac   : > { %v1249_v10 = vadd.f32 %v1242_v55, %v1181_v9  ;;  %v1183_v11 = vpop.f32.mrb[1].mxu0 }
 0x1ad   : > { %v1606_v12 = vpop.eup %1605  ;;  %v1250_v13 = vadd.f32 %v1242_v55, %v1183_v11  ;;  %v1185_v14 = vpop.f32.mrb[2].mxu0 }
 0x1ae   : > { %v1287_v15 = vmul.f32 %v1606_v12, %v1251_v60  ;;  %v1255_v16 = vsub.f32 0.0, %v1249_v10  ;;  %v1252_v17 = vadd.f32 %v1247_v59, %v1185_v14  ;;  %v1187_v18 = vpop.f32.mrb[3].mxu0 }
 0x1af   : > { %v1608_v19 = vpop.eup %1607  ;;  %v1256_v20 = vsub.f32 0.0, %v1250_v13  ;;  %v1253_v21 = vadd.f32 %v1247_v59, %v1187_v18 }
 0x1b0   : > { %v1455_v22 = vpack.c.bf16 %v1287_v15, %v1287_v15  ;;  %v1290_v23 = vmul.f32 %v1608_v19, %v1254_v2  ;;  %v1261_v24 = vmul.f32 1.442695, %v1255_v16  ;;  %v1258_v25 = vsub.f32 0.0, %v1252_v17 }
 0x1b1   : > { %v1263_v0 = vmul.f32 1.442695, %v1256_v20  ;;  %v1259_v26 = vsub.f32 0.0, %v1253_v21 }
 0x1b2   : > { %1313 = vst.msk [vmem:[%s1815_s21 + $0x8] sm:$0xf] %vm1312_vm6, %v1455_v22  ;;  %v1457_v27 = vpack.c.bf16 %v1290_v23, %v1290_v23  ;;  %1609 = vpow2.f32 %v1261_v24  ;;  %v1267_v28 = vmul.f32 1.442695, %v1258_v25 }
 0x1b3   : > { %1611 = vpow2.f32 %v1263_v0  ;;  %v1269_v29 = vmul.f32 1.442695, %v1259_v26 }
 0x1b4   : > { %1315 = vst.msk [vmem:[%s1815_s21 + $0x14] sm:$0xf] %vm1312_vm6, %v1457_v27  ;;  %1613 = vpow2.f32 %v1267_v28 }
 0x1b5   : > { %1615 = vpow2.f32 %v1269_v29 }
 0x1bc   : > { %v1610_v30 = vpop.eup %1609 }
 0x1bd   : > { %v1612_v31 = vpop.eup %1611  ;;  %v1273_v32 = vadd.f32 1.0, %v1610_v30 }
 0x1be   : > { %v1614_v33 = vpop.eup %1613  ;;  %v1274_v34 = vadd.f32 1.0, %v1612_v31 }
 0x1bf   : > { %v1616_v35 = vpop.eup %1615  ;;  %1617 = vrcp.f32 %v1273_v32  ;;  %v1276_v36 = vadd.f32 1.0, %v1614_v33 }
 0x1c0   : > { %1619 = vrcp.f32 %v1274_v34  ;;  %v1277_v37 = vadd.f32 1.0, %v1616_v35 }
 0x1c1   : > { %1621 = vrcp.f32 %v1276_v36 }
 0x1c2   : > { %1623 = vrcp.f32 %v1277_v37 }
 0x1c9   : > { %v1618_v38 = vpop.eup %1617 }
 0x1ca   : > { %v1620_v39 = vpop.eup %1619  ;;  %v1285_v40 = vmul.f32 %v1618_v38, %v1249_v10 }
 0x1cb   : > { %v1622_v41 = vpop.eup %1621  ;;  %v1286_v42 = vmul.f32 %v1620_v39, %v1250_v13 }
 0x1cc   : > { %v1624_v43 = vpop.eup %1623  ;;  %v1288_v44 = vmul.f32 %v1622_v41, %v1252_v17 }
 0x1cd   : > { %v1454_v45 = vpack.c.bf16 %v1286_v42, %v1285_v40  ;;  %v1289_v46 = vmul.f32 %v1624_v43, %v1253_v21 }
 0x1cf   : > { %1311 = vst [vmem:[%s1815_s21] sm:$0xff] %v1454_v45  ;;  %v1456_v47 = vpack.c.bf16 %v1289_v46, %v1288_v44 }
 0x1d1   : > { %1314 = vst [vmem:[%s1815_s21 + $0xc] sm:$0xff] %v1456_v47 }
 0x1d2 PF: > { %s13_s12 = sadd.s32 1, %s1631_s12  }
 0x1d3   : > { %p10_p4 = scmp.ge.s32.totalorder %s13_s12, 4  }
 0x1d5   :  { %12 = sbr.rel (!%p10_p4) target bundleno = 1 (0x1), region = 73 }

// kernel: _model.3
= control target key start
LH: loop header
LB: loop body
LE: loop exit
PB: predicated region body
PF: predicated region fallthrough
CT: control target
= control target key end

     0   :  { %s1280_s12 = smov 0   ;;  %s1388_s0 = inlined_call_operand.vmem [shape: bf16[9,32,16], index: 0, kind: input, shape index: {}]   ;;  %s1389_s1 = inlined_call_operand.vmem [shape: f32[32,1], index: 1, kind: input, shape index: {}]   ;;  %s1390_s2 = inlined_call_operand.vmem [shape: bf16[2,4,16,90], index: 2, kind: input, shape index: {}]   ;;  %s1391_s3 = inlined_call_operand.vmem [shape: f32[2,32,72], index: 3, kind: output, shape index: {}]  }
   0x1 LB: > { %s992_s13 = sadd.s32 4294967295, %s1254_s12   ;;  %p996_p0 = scmp.ge.s32.totalorder %s1254_s12, 1  ;;  %s1254_s12 = sphi %s1280_s12, %s13_s12  }
   0x2   : > { %p137_p1 = scmp.lt.s32.totalorder %s1254_s12, 3 }
   0x4   : > { %p138_p2 = pnand %p996_p0, %p137_p1 }
   0x5   : > { %p161_p3 = scmp.lt.s32.totalorder (!%p138_p2), %s992_s13, 1  ;;  %v1213_v0 = vld [vmem:[%s1388_s0 + $0x10] sm:$0xff] (!%p138_p2)   ;;  %vm202_vm0 = vcmask (!%p138_p2), 130048   ;;  %v1217_v1 = vld [vmem:[%s1388_s0 + $0x40] sm:$0xff] (!%p138_p2)   ;;  %s1256_s22 = smov (!%p138_p2), 127   ;;  %v1214_v6 = vld [vmem:[%s1388_s0 + $0x18] sm:$0xff] (!%p138_p2)  }
   0x6   : > { %141 = sbr.rel (%p138_p2) target bundleno = 422 (0x1a6), region = 32  ;;  %1112 = vmatprep.mubr.msk.bf16.mxu1 (!%p138_p2), %vm202_vm0, %v1213_v0  ;;  %1136 = vmatprep.mubr.msk.bf16.mxu0 (!%p138_p2), %vm202_vm0, %v1217_v1  ;;  %v1216_v7 = vld [vmem:[%s1388_s0] sm:$0xff] (!%p138_p2)   ;;  %s1257_s27 = smov (!%p138_p2), 119   ;;  %v1219_v8 = vld [vmem:[%s1388_s0 + $0x48] sm:$0xff] (!%p138_p2)   ;;  %v1221_v9 = vld [vmem:[%s1388_s0 + $0x50] sm:$0xff] (!%p138_p2)   ;;  %v1259_v13 = vmov (!%p138_p2), 0  }
   0x7   : > { %s1258_s5 = smov (!%p138_p2), 118   ;;  %v1218_v10 = vld [vmem:[%s1388_s0 + $0x8] sm:$0xff] (!%p138_p2)   ;;  %v1220_v11 = vld [vmem:[%s1388_s0 + $0x20] sm:$0xff] (!%p138_p2)   ;;  %1208 = vset.pattern.permute.xlu1 (!%p138_p2), %v1259_v13  ;;  %1209 = vset.pattern.permute.xlu0 (!%p138_p2), %v1259_v13  ;;  %v882_v15 = vld [vmem:[%s1389_s1 + $0x10] sm:$0xff] (!%p138_p2)  ;;  %vm932_vm1 = vcmask (!%p138_p2), 588800  }
   0x8   : > { %v880_v12 = vld [vmem:[%s1389_s1] sm:$0xff] (!%p138_p2)  ;;  %v881_v14 = vld [vmem:[%s1389_s1 + $0x8] sm:$0xff] (!%p138_p2)  ;;  %v883_v16 = vld [vmem:[%s1389_s1 + $0x18] sm:$0xff] (!%p138_p2) }
   0x9   : > { %v1223_v19 = vld [vmem:[%s1388_s0 + $0x58] sm:$0xff] (!%p138_p2)   ;;  %v1222_v20 = vld [vmem:[%s1388_s0 + $0x28] sm:$0xff] (!%p138_p2)   ;;  %v1224_v21 = vld [vmem:[%s1388_s0 + $0x30] sm:$0xff] (!%p138_p2)  }
   0xa   : > { %v1225_v23 = vld [vmem:[%s1388_s0 + $0x60] sm:$0xff] (!%p138_p2)   ;;  %v1227_v25 = vld [vmem:[%s1388_s0 + $0x68] sm:$0xff] (!%p138_p2)   ;;  %v1226_v26 = vld [vmem:[%s1388_s0 + $0x38] sm:$0xff] (!%p138_p2)  }
   0xb   : > { %v1228_v27 = vld [vmem:[%s1388_s0 + $0x70] sm:$0xff] (!%p138_p2)   ;;  %v1229_v29 = vld [vmem:[%s1388_s0 + $0x78] sm:$0xff] (!%p138_p2)   ;;  %v1230_v30 = vld [vmem:[%s1388_s0 + $0x80] sm:$0xff] (!%p138_p2)  }
   0xc   : > { %v1231_v31 = vld [vmem:[%s1388_s0 + $0x88] sm:$0xff] (!%p138_p2)  }
   0xd   : > { %s1393_s13 = smov (!%p161_p3, %s992_s13), 1 }
   0xe   : > { %s1081_s16 = sshll.u32 %s1393_s13, 5 }
   0xf   : > { %s165_s21 = scalar_lea.vmem %s1390_s2, %s1081_s16  ;;  %s170_s19 = scalar_lea.vmem %s1391_s3, %s1081_s16 }
  0x10   : > { %v1210_v2 = vld [vmem:[%s165_s21 + $0x10] sm:$0xff]   ;;  %v1211_v3 = vld [vmem:[%s165_s21] sm:$0xff]   ;;  %v1212_v4 = vld [vmem:[%s165_s21 + $0x8] sm:$0xff]  }
  0x11   : > { %587 = vrot.lane.b32.xlu0 %v1210_v2, %s1256_s22  ;;  %344 = vrot.lane.b32.xlu1 %v1211_v3, %s1256_s22  ;;  %v1215_v5 = vld [vmem:[%s165_s21 + $0x18] sm:$0xff]  }
  0x12   : > { %1110 = vmatprep.subr.bf16.mxu1 %v1212_v4  ;;  %1134 = vmatprep.subr.bf16.mxu0 %v1215_v5 }
  0x13   : > { %1111 = vmatpush3.bf16.msra.mxu1 %v1212_v4  ;;  %1135 = vmatpush3.bf16.msra.mxu0 %v1215_v5 }
  0x14   : > { %1116 = vmatprep.subr.bf16.mxu1 %v1211_v3 }
  0x15   : > { %664 = vrot.lane.b32.xlu0 %v1211_v3, %s1257_s27  ;;  %741 = vrot.lane.b32.xlu1 %v1212_v4, %s1257_s27 }
  0x16   : > { %1113 = vmatmul.mubr.msk.bf16.vlgmr.msra.gmra.mrb[0].mxu1 %vm202_vm0, %v1214_v6  ;;  %1137 = vmatmul.mubr.msk.bf16.vlgmr.msra.gmra.mrb[0].mxu0 %vm202_vm0, %v1219_v8 }
  0x17   : > { %1117 = vmatpush3.bf16.msra.mxu1 %v1211_v3  ;;  %1118 = vmatprep.mubr.msk.bf16.mxu1 %vm202_vm0, %v1216_v7 }
  0x18   : > { %1142 = vmatprep.mubr.msk.bf16.mxu0 %vm202_vm0, %v1221_v9 }
  0x19   : > { %818 = vrot.lane.b32.xlu0 %v1211_v3, %s1258_s5  ;;  %886 = vperm.xlu1 %1208, %v880_v12  }
  0x1d   : > { %891 = vperm.xlu0 %1209, %v881_v14   ;;  %896 = vperm.xlu1 %1208, %v882_v15  }
  0x21   : > { %901 = vperm.xlu1 %1208, %v883_v16  }
  0x22   : > { %1119 = vmatmul.mubr.msk.bf16.vlgmr.msra.gmra.mrb[0].mxu1 %vm202_vm0, %v1218_v10 }
  0x23   : > { %1124 = vmatprep.mubr.msk.bf16.mxu1 %vm202_vm0, %v1220_v11 }
  0x83   : > { %v588_v17 = vpop.permute.xlu0 %587  ;;  %v345_v18 = vpop.permute.xlu1 %344 }
  0x84   : > { %1140 = vmatprep.subr.bf16.mxu0 %v588_v17  ;;  %1122 = vmatprep.subr.bf16.mxu1 %v345_v18 }
  0x85   : > { %1141 = vmatpush3.bf16.msra.mxu0 %v588_v17  ;;  %1123 = vmatpush3.bf16.msra.mxu1 %v345_v18 }
  0x86   : > { %1128 = vmatprep.subr.bf16.mxu1 %v1210_v2 }
  0x87   : > { %v665_v22 = vpop.permute.xlu0 %664  ;;  %v742_v24 = vpop.permute.xlu1 %741 }
  0x88   : > { %1143 = vmatmul.mubr.msk.bf16.vlgmr.msra.gmra.mrb[0].mxu0 %vm202_vm0, %v1223_v19  ;;  %1146 = vmatprep.subr.bf16.mxu0 %v665_v22 }
  0x89   : > { %1125 = vmatmul.mubr.msk.bf16.vlgmr.msra.gmra.mrb[0].mxu1 %vm202_vm0, %v1222_v20  ;;  %1147 = vmatpush3.bf16.msra.mxu0 %v665_v22 }
  0x8a   : > { %1129 = vmatpush3.bf16.msra.mxu1 %v1210_v2  ;;  %1130 = vmatprep.mubr.msk.bf16.mxu1 %vm202_vm0, %v1224_v21 }
  0x8b   : > { %1148 = vmatprep.mubr.msk.bf16.mxu0 %vm202_vm0, %v1225_v23  ;;  %1152 = vmatprep.subr.bf16.mxu0 %v742_v24  ;;  %v819_v28 = vpop.permute.xlu0 %818 }
  0x94   : > { %1149 = vmatmul.mubr.msk.bf16.vlgmr.msra.gmra.mrb[0].mxu0 %vm202_vm0, %v1227_v25 }
  0x95   : > { %1131 = vmatmul.mubr.msk.bf16.vlgmr.msra.gmra.mrb[0].mxu1 %vm202_vm0, %v1226_v26  ;;  %1153 = vmatpush3.bf16.msra.mxu0 %v742_v24 }
  0x96   : > { %1154 = vmatprep.mubr.msk.bf16.mxu0 %vm202_vm0, %v1228_v27  ;;  %1158 = vmatprep.subr.bf16.mxu0 %v819_v28 }
  0x98   : > { %v887_v36 = vpop.permute.xlu1 %886 }
  0x9c   : > { %v897_v37 = vpop.permute.xlu1 %896  ;;  %v892_v46 = vpop.permute.xlu0 %891 }
  0xa0   : > { %1155 = vmatmul.mubr.msk.bf16.vlgmr.msra.gmra.mrb[0].mxu0 %vm202_vm0, %v1229_v29  ;;  %v902_v49 = vpop.permute.xlu1 %901 }
  0xa1   : > { %1159 = vmatpush3.bf16.msra.mxu0 %v819_v28  ;;  %1160 = vmatprep.mubr.msk.bf16.mxu0 %vm202_vm0, %v1230_v30 }
  0xac   : > { %1161 = vmatmul.mubr.msk.bf16.vlgmr.msra.gmra.mrb[0].mxu0 %vm202_vm0, %v1231_v31 }
 0x168   : > { %v1132_v32 = vpop.f32.mrb[0].mxu1 }
 0x169   : > { %v470_v33 = vpop.f32.mrb[1].mxu1 }
 0x16a   : > { %v1133_v34 = vpop.f32.mrb[2].mxu1 }
 0x16b   : > { %v473_v35 = vpop.f32.mrb[3].mxu1 }
 0x17f   : > { %v1162_v38 = vpop.f32.mrb[0].mxu0 }
 0x180   : > { %v1164_v39 = vadd.f32 %v1162_v38, %v1132_v32  ;;  %v861_v40 = vpop.f32.mrb[1].mxu0 }
 0x181   : > { %v1165_v41 = vadd.f32 %v861_v40, %v470_v33  ;;  %v1163_v42 = vpop.f32.mrb[2].mxu0 }
 0x182   : > { %v906_v43 = vadd.f32 %v1164_v39, %v897_v37  ;;  %v1166_v44 = vadd.f32 %v1163_v42, %v1133_v34  ;;  %v864_v45 = vpop.f32.mrb[3].mxu0 }
 0x183   : > { %v904_v47 = vadd.f32 %v1165_v41, %v887_v36  ;;  %v1167_v48 = vadd.f32 %v864_v45, %v473_v35 }
 0x184   : > { %v910_v50 = vsub.f32 0.0, %v906_v43  ;;  %v907_v51 = vadd.f32 %v1166_v44, %v902_v49 }
 0x185   : > { %v908_v52 = vsub.f32 0.0, %v904_v47  ;;  %v905_v53 = vadd.f32 %v1167_v48, %v892_v46 }
 0x186   : > { %v916_v54 = vmul.f32 1.442695, %v910_v50  ;;  %v911_v55 = vsub.f32 0.0, %v907_v51 }
 0x187   : > { %v912_v56 = vmul.f32 1.442695, %v908_v52  ;;  %v909_v57 = vsub.f32 0.0, %v905_v53 }
 0x188   : > { %1232 = vpow2.f32 %v916_v54  ;;  %v918_v58 = vmul.f32 1.442695, %v911_v55 }
 0x189   : > { %1234 = vpow2.f32 %v912_v56  ;;  %v914_v59 = vmul.f32 1.442695, %v909_v57 }
 0x18a   : > { %1236 = vpow2.f32 %v918_v58 }
 0x18b   : > { %1238 = vpow2.f32 %v914_v59 }
 0x192   : > { %v1233_v60 = vpop.eup %1232 }
 0x193   : > { %v1235_v61 = vpop.eup %1234  ;;  %v922_v62 = vadd.f32 1.0, %v1233_v60 }
 0x194   : > { %v1237_v63 = vpop.eup %1236  ;;  %v920_v0 = vadd.f32 1.0, %v1235_v61 }
 0x195   : > { %v1239_v1 = vpop.eup %1238  ;;  %1240 = vrcp.f32 %v922_v62  ;;  %v923_v2 = vadd.f32 1.0, %v1237_v63 }
 0x196   : > { %1242 = vrcp.f32 %v920_v0  ;;  %v921_v3 = vadd.f32 1.0, %v1239_v1 }
 0x197   : > { %1244 = vrcp.f32 %v923_v2 }
 0x198   : > { %1246 = vrcp.f32 %v921_v3 }
 0x19f   : > { %v1241_v4 = vpop.eup %1240 }
 0x1a0   : > { %v1243_v5 = vpop.eup %1242  ;;  %v930_v6 = vmul.f32 %v1241_v4, %v906_v43 }
 0x1a1   : > { %v1245_v7 = vpop.eup %1244  ;;  %v928_v8 = vmul.f32 %v1243_v5, %v904_v47 }
 0x1a2   : > { %v1247_v9 = vpop.eup %1246  ;;  %935 = vst.msk [vmem:[%s170_s19 + $0x10] sm:$0xff] %vm932_vm1, %v930_v6  ;;  %v931_v10 = vmul.f32 %v1245_v7, %v907_v51 }
 0x1a3   : > { %933 = vst.msk [vmem:[%s170_s19] sm:$0xff] %vm932_vm1, %v928_v8  ;;  %v929_v11 = vmul.f32 %v1247_v9, %v905_v53 }
 0x1a4   : > { %936 = vst.msk [vmem:[%s170_s19 + $0x18] sm:$0xff] %vm932_vm1, %v931_v10 }
 0x1a5   : > { %934 = vst.msk [vmem:[%s170_s19 + $0x8] sm:$0xff] %vm932_vm1, %v929_v11 }
 0x1a6 PF: > { %s13_s12 = sadd.s32 1, %s1254_s12  }
 0x1a7   : > { %p10_p4 = scmp.ge.s32.totalorder %s13_s12, 4  }
 0x1a9   :  { %12 = sbr.rel (!%p10_p4) target bundleno = 1 (0x1), region = 73 }

</bundles_post_ra>
